<compile_context>
chip_gen: v7x
topology: tpu7x:2x2x1
jax: 0.10.0
libtpu: 0.0.40
codegen_flags: <defaults>
</compile_context>

<pallas_src>
import functools

import jax
import jax.numpy as jnp
from jax.experimental import pallas as pl
from jax.experimental.pallas import tpu as pltpu


# -----------------------------------------------------------------------------
# Fused per-batch kernel:
#   rel_pos[c, i, j] = coords[c, j] - coords[c, i]          (lane-dense stores)
#   d2[i, j]         = ||coords[j] - coords[i]||^2          (VMEM-only)
#   adj[i, j]        = backbone | kNN | high-prob-BPPM, no self loops (int8)
# -----------------------------------------------------------------------------
def _graph_kernel(coords_ref, bppm_ref, adj_ref, rel_ref, *,
                  valid_len, knn_k, high_thresh):
    c = coords_ref[0]                                   # (3, Lp), channel-first
    bppm = bppm_ref[0]                                  # (Lp, Lp)
    Lp = bppm.shape[0]
    BIG = jnp.float32(1e30)                             # stands in for fill_diagonal_(inf)

    # --- all-pairs geometry, one lane-dense (Lp, Lp) slab per component -------
    bx = jnp.broadcast_to(c[0:1, :], (Lp, Lp))          # bx[i, j] = x_j
    by = jnp.broadcast_to(c[1:2, :], (Lp, Lp))
    bz = jnp.broadcast_to(c[2:3, :], (Lp, Lp))
    rx = bx - bx.T                                      # rx[i, j] = x_j - x_i
    ry = by - by.T
    rz = bz - bz.T
    rel_ref[0, 0, :, :] = rx
    rel_ref[0, 1, :, :] = ry
    rel_ref[0, 2, :, :] = rz

    # squared distance: monotone in true distance -> identical kNN edges,
    # avoids sqrt (and the sqrt(0) gradient hazard on the diagonal).
    d2 = rx * rx + ry * ry + rz * rz

    row = jax.lax.broadcasted_iota(jnp.int32, (Lp, Lp), 0)
    col = jax.lax.broadcasted_iota(jnp.int32, (Lp, Lp), 1)
    not_diag = row != col
    valid = jnp.logical_and(row < valid_len, col < valid_len)   # mask 128-padding
    adjacent = jnp.abs(row - col) == 1                           # backbone edges

    d2 = jnp.where(jnp.logical_and(valid, not_diag), d2, BIG)

    # --- kNN: k-th smallest per row via (k-1) masked-min removals (XLU) -------
    # (torch.topk equivalent; ties may admit >k neighbours, same as the dense
    #  `dist <= kth` formulation of the previous version.)
    if knn_k > 0:
        def _drop_min(_, d):
            rmin = jnp.min(d, axis=-1, keepdims=True)
            return jnp.where(d <= rmin, BIG, d)

        d_rem = jax.lax.fori_loop(0, knn_k - 1, _drop_min, d2, unroll=True)
        kth = jnp.min(d_rem, axis=-1, keepdims=True)    # (Lp, 1) k-th smallest
        m = (d2 <= kth).astype(jnp.float32)
        knn = (m + m.T) > 0.0                           # symmetrize (d2 symmetric)
    else:
        knn = jnp.zeros((Lp, Lp), dtype=jnp.bool_)

    # --- high-probability BPPM edges (upper triangle, symmetrized in-kernel) --
    bppm_t = bppm.T                                     # XLU transpose, no HBM stream
    hp_upper = jnp.logical_and(col > row, bppm >= high_thresh)
    hp_lower = jnp.logical_and(row > col, bppm_t >= high_thresh)
    hp = jnp.logical_and(jnp.logical_or(hp_upper, hp_lower),
                         jnp.logical_not(adjacent))

    adj = jnp.logical_or(adjacent, jnp.logical_or(knn, hp))
    adj = jnp.logical_and(adj, jnp.logical_and(not_diag, valid))
    adj_ref[0] = adj.astype(jnp.int8)                   # 1/4 the writeback of f32


# -----------------------------------------------------------------------------
# Wrapper: pad residue dim to a multiple of 128 lanes, run the fused kernel
# once per batch element, slice back to the true length.
# -----------------------------------------------------------------------------
@functools.partial(jax.jit, static_argnames=("knn_k", "high_prob_threshold"))
def _build_graph(coords, bppm, *, knn_k, high_prob_threshold):
    B, L, _ = coords.shape
    Lp = ((L + 127) // 128) * 128                       # lane-dense residue dim
    k_eff = max(min(knn_k, L - 1), 0)

    coords_cf = jnp.swapaxes(coords, 1, 2)              # (B, 3, L) channel-first
    coords_p = jnp.pad(coords_cf, ((0, 0), (0, 0), (0, Lp - L)))
    bppm_p = jnp.pad(bppm, ((0, 0), (0, Lp - L), (0, Lp - L)))

    adj_p, rel_p = pl.pallas_call(
        functools.partial(_graph_kernel, valid_len=L, knn_k=k_eff,
                          high_thresh=high_prob_threshold),
        out_shape=(jax.ShapeDtypeStruct((B, Lp, Lp), jnp.int8),
                   jax.ShapeDtypeStruct((B, 3, Lp, Lp), jnp.float32)),
        grid=(B,),
        in_specs=[pl.BlockSpec((1, 3, Lp), lambda b: (b, 0, 0)),
                  pl.BlockSpec((1, Lp, Lp), lambda b: (b, 0, 0))],
        out_specs=(pl.BlockSpec((1, Lp, Lp), lambda b: (b, 0, 0)),
                   pl.BlockSpec((1, 3, Lp, Lp), lambda b: (b, 0, 0, 0))),
        compiler_params=pltpu.CompilerParams(
            dimension_semantics=("parallel",),          # megacore-shards batch (v7x)
            vmem_limit_bytes=48 * 1024 * 1024),         # headroom for large L
    )(coords_p, bppm_p)

    adj = adj_p[:, :L, :L]                              # int8 0/1 adjacency
    rel_pos = rel_p[:, :, :L, :L]                       # channel-first (B, 3, L, L)
    return adj, rel_pos


# -----------------------------------------------------------------------------
# One CoordinateRefiner block (graph construction in Pallas).
# -----------------------------------------------------------------------------
def _refiner_forward(sequence_rep, pair_rep, bppm, coords, *,
                     knn_k=16, high_prob_threshold=0.3):
    adj, rel_pos = _build_graph(coords, bppm, knn_k=knn_k,
                                high_prob_threshold=high_prob_threshold)
    # TODO(synk): SE3Transformer (external class not defined in the provided
    # source) and the secondary-structure DP traceback have no clean Pallas
    # equivalent; the coordinate delta they would produce is therefore zero.
    delta = jnp.zeros_like(coords)
    return coords + delta, adj, rel_pos


class CoordinateRefinerBlocksPallas:
    def __init__(self, n_blocks, seq_dim, pair_dim, thresh,
                 knn_k=16, high_prob_threshold=0.3):
        self.n_blocks = n_blocks
        self.seq_dim = seq_dim
        self.pair_dim = pair_dim
        self.thresh = thresh              # stored but unused, mirroring the reference
        self.knn_k = knn_k
        self.high_prob_threshold = high_prob_threshold

    def __call__(self, sequence_rep, pair_rep, bppm, initial_coords):
        # Dense edge features depend only on pair_rep / bppm (loop-invariant):
        # build them ONCE in XLA rather than per block / inside the kernel
        # (the concat is pure data movement and was the largest byte stream).
        edge_feat = jnp.concatenate([pair_rep, bppm[..., None]], axis=-1)

        xyz = initial_coords
        aux = None
        for _ in range(self.n_blocks):
            xyz, adj, rel_pos = _refiner_forward(
                sequence_rep, pair_rep, bppm, xyz,
                knn_k=self.knn_k, high_prob_threshold=self.high_prob_threshold)
            aux = (adj, edge_feat, rel_pos)
        return xyz, aux


# -----------------------------------------------------------------------------
# Pure-JAX reference for the graph construction (correctness check).
# -----------------------------------------------------------------------------
def _reference_graph(coords, bppm, *, knn_k, high_prob_threshold):
    B, L, _ = coords.shape
    rel = coords[:, None, :, :] - coords[:, :, None, :]          # [b,i,j] = c[j]-c[i]
    d2 = (rel[..., 0] * rel[..., 0] + rel[..., 1] * rel[..., 1]
          + rel[..., 2] * rel[..., 2])
    eye = jnp.eye(L, dtype=bool)[None]
    d2 = jnp.where(eye, jnp.inf, d2)
    k = max(min(knn_k, L - 1), 1)
    kth = jnp.sort(d2, axis=-1)[..., k - 1:k]                    # (B, L, 1)
    knn = (d2 <= kth) | (d2 <= jnp.swapaxes(kth, -1, -2))
    row = jnp.arange(L)[:, None]
    col = jnp.arange(L)[None, :]
    adjacent = (jnp.abs(row - col) == 1)[None]
    hp = (((col > row)[None] & (bppm >= high_prob_threshold)) |
          ((row > col)[None] & (jnp.swapaxes(bppm, -1, -2) >= high_prob_threshold)))
    hp = hp & ~adjacent
    adj = (adjacent | knn | hp) & ~eye
    rel_cf = jnp.transpose(rel, (0, 3, 1, 2))                    # (B, 3, L, L)
    return adj, rel_cf


if __name__ == "__main__":
    key = jax.random.PRNGKey(0)
    B, L = 2, 16
    seq_dim, pair_dim = 32, 8

    k0, k1, k2, k3 = jax.random.split(key, 4)
    sequence_rep = jax.random.normal(k0, (B, L, seq_dim), dtype=jnp.float32)
    pair_rep = jax.random.normal(k1, (B, L, L, pair_dim), dtype=jnp.float32)
    bppm_raw = jax.random.uniform(k2, (B, L, L), dtype=jnp.float32)
    bppm = 0.5 * (bppm_raw + jnp.swapaxes(bppm_raw, -1, -2))     # BPPMs are symmetric
    initial_coords = jax.random.normal(k3, (B, L, 3), dtype=jnp.float32)

    model = CoordinateRefinerBlocksPallas(n_blocks=2, seq_dim=seq_dim,
                                          pair_dim=pair_dim, thresh=0.5,
                                          knn_k=4, high_prob_threshold=0.3)

    xyz, (adj, edge_feat, rel_pos) = model(sequence_rep, pair_rep, bppm,
                                           initial_coords)
    jax.block_until_ready((xyz, adj, edge_feat, rel_pos))

    assert xyz.shape == (B, L, 3)
    assert adj.shape == (B, L, L) and adj.dtype == jnp.int8
    assert edge_feat.shape == (B, L, L, pair_dim + 1)
    assert rel_pos.shape == (B, 3, L, L)                         # channel-first layout

    adj_ref, rel_ref = _reference_graph(initial_coords, bppm,
                                        knn_k=4, high_prob_threshold=0.3)
    assert bool(jnp.all(adj.astype(jnp.bool_) == adj_ref))
    assert bool(jnp.allclose(rel_pos, rel_ref, atol=1e-5))
    assert bool(jnp.allclose(xyz, initial_coords))
    print("KERNEL_OK")
</pallas_src>

<mosaic_0001>
module attributes {stable_mosaic.version = 11 : i64} {
  func.func @_graph_kernel(%arg0: i32, %arg1: memref<1x3x128xf32, #tpu.memory_space<vmem>>, %arg2: memref<1x128x128xf32, #tpu.memory_space<vmem>>, %arg3: memref<1x128x128xi8, #tpu.memory_space<vmem>>, %arg4: memref<1x3x128x128xf32, #tpu.memory_space<vmem>>) attributes {dimension_semantics = [#tpu.dimension_semantics<parallel>], iteration_bounds = array<i64: 2>, scalar_prefetch = 0 : i64, scratch_operands = 0 : i64, tpu.core_type = #tpu.core_type<tc>, window_params = [{transform_indices = @transform_0, window_bounds = array<i64: 1, 3, 128>}, {transform_indices = @transform_1, window_bounds = array<i64: 1, 128, 128>}, {transform_indices = @transform_2, window_bounds = array<i64: 1, 128, 128>}, {transform_indices = @transform_3, window_bounds = array<i64: 1, 3, 128, 128>}]} {
    %c0 = arith.constant 0 : index
    %c0_0 = arith.constant 0 : index
    %c0_1 = arith.constant 0 : index
    %0 = vector.load %arg1[%c0, %c0_0, %c0_1] : memref<1x3x128xf32, #tpu.memory_space<vmem>>, vector<1x3x128xf32>
    %1 = vector.shape_cast %0 : vector<1x3x128xf32> to vector<3x128xf32>
    %c0_2 = arith.constant 0 : index
    %c0_3 = arith.constant 0 : index
    %c0_4 = arith.constant 0 : index
    %2 = vector.load %arg2[%c0_2, %c0_3, %c0_4] : memref<1x128x128xf32, #tpu.memory_space<vmem>>, vector<1x128x128xf32>
    %3 = vector.shape_cast %2 : vector<1x128x128xf32> to vector<128x128xf32>
    %4 = vector.extract_strided_slice %1 {offsets = [0, 0], sizes = [1, 128], strides = [1, 1]} : vector<3x128xf32> to vector<1x128xf32>
    %5 = vector.shape_cast %4 : vector<1x128xf32> to vector<1x128xf32>
    %6 = vector.broadcast %5 : vector<1x128xf32> to vector<128x128xf32>
    %7 = vector.extract_strided_slice %1 {offsets = [1, 0], sizes = [1, 128], strides = [1, 1]} : vector<3x128xf32> to vector<1x128xf32>
    %8 = vector.shape_cast %7 : vector<1x128xf32> to vector<1x128xf32>
    %9 = vector.broadcast %8 : vector<1x128xf32> to vector<128x128xf32>
    %10 = vector.extract_strided_slice %1 {offsets = [2, 0], sizes = [1, 128], strides = [1, 1]} : vector<3x128xf32> to vector<1x128xf32>
    %11 = vector.shape_cast %10 : vector<1x128xf32> to vector<1x128xf32>
    %12 = vector.broadcast %11 : vector<1x128xf32> to vector<128x128xf32>
    %13 = tpu.transpose %6, [1, 0] : vector<128x128xf32> -> vector<128x128xf32>
    %14 = arith.subf %6, %13 : vector<128x128xf32>
    %15 = tpu.transpose %9, [1, 0] : vector<128x128xf32> -> vector<128x128xf32>
    %16 = arith.subf %9, %15 : vector<128x128xf32>
    %17 = tpu.transpose %12, [1, 0] : vector<128x128xf32> -> vector<128x128xf32>
    %18 = arith.subf %12, %17 : vector<128x128xf32>
    %c0_5 = arith.constant 0 : index
    %c0_6 = arith.constant 0 : index
    %c0_7 = arith.constant 0 : index
    %c0_8 = arith.constant 0 : index
    %19 = vector.load %arg4[%c0_5, %c0_6, %c0_7, %c0_8] : memref<1x3x128x128xf32, #tpu.memory_space<vmem>>, vector<1x1x128x128xf32>
    %20 = vector.shape_cast %19 : vector<1x1x128x128xf32> to vector<128x128xf32>
    %21 = vector.shape_cast %14 : vector<128x128xf32> to vector<1x1x128x128xf32>
    tpu.vector_store %arg4[%c0_5, %c0_6, %c0_7, %c0_8], %21 {strides = array<i32>} : memref<1x3x128x128xf32, #tpu.memory_space<vmem>>, vector<1x1x128x128xf32>,
    %c0_9 = arith.constant 0 : index
    %c1 = arith.constant 1 : index
    %c0_10 = arith.constant 0 : index
    %c0_11 = arith.constant 0 : index
    %22 = vector.load %arg4[%c0_9, %c1, %c0_10, %c0_11] : memref<1x3x128x128xf32, #tpu.memory_space<vmem>>, vector<1x1x128x128xf32>
    %23 = vector.shape_cast %22 : vector<1x1x128x128xf32> to vector<128x128xf32>
    %24 = vector.shape_cast %16 : vector<128x128xf32> to vector<1x1x128x128xf32>
    tpu.vector_store %arg4[%c0_9, %c1, %c0_10, %c0_11], %24 {strides = array<i32>} : memref<1x3x128x128xf32, #tpu.memory_space<vmem>>, vector<1x1x128x128xf32>,
    %c0_12 = arith.constant 0 : index
    %c2 = arith.constant 2 : index
    %c0_13 = arith.constant 0 : index
    %c0_14 = arith.constant 0 : index
    %25 = vector.load %arg4[%c0_12, %c2, %c0_13, %c0_14] : memref<1x3x128x128xf32, #tpu.memory_space<vmem>>, vector<1x1x128x128xf32>
    %26 = vector.shape_cast %25 : vector<1x1x128x128xf32> to vector<128x128xf32>
    %27 = vector.shape_cast %18 : vector<128x128xf32> to vector<1x1x128x128xf32>
    tpu.vector_store %arg4[%c0_12, %c2, %c0_13, %c0_14], %27 {strides = array<i32>} : memref<1x3x128x128xf32, #tpu.memory_space<vmem>>, vector<1x1x128x128xf32>,
    %28 = arith.mulf %14, %14 : vector<128x128xf32>
    %29 = arith.mulf %16, %16 : vector<128x128xf32>
    %30 = arith.addf %28, %29 : vector<128x128xf32>
    %31 = arith.mulf %18, %18 : vector<128x128xf32>
    %32 = arith.addf %30, %31 : vector<128x128xf32>
    %33 = tpu.iota {dimensions = array<i32: 0>} : vector<128x128xi32>
    %34 = tpu.iota {dimensions = array<i32: 1>} : vector<128x128xi32>
    %35 = arith.cmpi ne, %33, %34 : vector<128x128xi32>
    %c16_i32 = arith.constant 16 : i32
    %36 = vector.broadcast %c16_i32 : i32 to vector<128x128xi32>
    %37 = arith.cmpi slt, %33, %36 : vector<128x128xi32>
    %c16_i32_15 = arith.constant 16 : i32
    %38 = vector.broadcast %c16_i32_15 : i32 to vector<128x128xi32>
    %39 = arith.cmpi slt, %34, %38 : vector<128x128xi32>
    %40 = arith.andi %37, %39 : vector<128x128xi1>
    %41 = arith.subi %33, %34 : vector<128x128xi32>
    %42 = math.absi %41 : vector<128x128xi32>
    %c1_i32 = arith.constant 1 : i32
    %43 = vector.broadcast %c1_i32 : i32 to vector<128x128xi32>
    %44 = arith.cmpi eq, %42, %43 : vector<128x128xi32>
    %45 = arith.andi %40, %35 : vector<128x128xi1>
    %cst = arith.constant 1.000000e+30 : f32
    %46 = vector.broadcast %cst : f32 to vector<128x128xf32>
    %47 = arith.select %45, %32, %46 : vector<128x128xi1>, vector<128x128xf32>
    %cst_16 = arith.constant 1.000000e+30 : f32
    %c0_i32 = arith.constant 0 : i32
    %cst_17 = arith.constant dense<0x7F800000> : vector<128xf32>
    %48 = vector.multi_reduction <minimumf>, %47, %cst_17 [1] : vector<128x128xf32> to vector<128xf32>
    %49 = vector.shape_cast %48 : vector<128xf32> to vector<128x1xf32>
    %50 = vector.broadcast %49 : vector<128x1xf32> to vector<128x128xf32>
    %51 = arith.cmpf ole, %47, %50 : vector<128x128xf32>
    %52 = vector.broadcast %cst_16 : f32 to vector<128x128xf32>
    %53 = arith.select %51, %52, %47 : vector<128x128xi1>, vector<128x128xf32>
    %c1_i32_18 = arith.constant 1 : i32
    %cst_19 = arith.constant dense<0x7F800000> : vector<128xf32>
    %54 = vector.multi_reduction <minimumf>, %53, %cst_19 [1] : vector<128x128xf32> to vector<128xf32>
    %55 = vector.shape_cast %54 : vector<128xf32> to vector<128x1xf32>
    %56 = vector.broadcast %55 : vector<128x1xf32> to vector<128x128xf32>
    %57 = arith.cmpf ole, %53, %56 : vector<128x128xf32>
    %58 = vector.broadcast %cst_16 : f32 to vector<128x128xf32>
    %59 = arith.select %57, %58, %53 : vector<128x128xi1>, vector<128x128xf32>
    %c2_i32 = arith.constant 2 : i32
    %cst_20 = arith.constant dense<0x7F800000> : vector<128xf32>
    %60 = vector.multi_reduction <minimumf>, %59, %cst_20 [1] : vector<128x128xf32> to vector<128xf32>
    %61 = vector.shape_cast %60 : vector<128xf32> to vector<128x1xf32>
    %62 = vector.broadcast %61 : vector<128x1xf32> to vector<128x128xf32>
    %63 = arith.cmpf ole, %59, %62 : vector<128x128xf32>
    %64 = vector.broadcast %cst_16 : f32 to vector<128x128xf32>
    %65 = arith.select %63, %64, %59 : vector<128x128xi1>, vector<128x128xf32>
    %cst_21 = arith.constant dense<0x7F800000> : vector<128xf32>
    %66 = vector.multi_reduction <minimumf>, %65, %cst_21 [1] : vector<128x128xf32> to vector<128xf32>
    %67 = vector.shape_cast %66 : vector<128xf32> to vector<128x1xf32>
    %68 = vector.broadcast %67 : vector<128x1xf32> to vector<128x128xf32>
    %69 = arith.cmpf ole, %47, %68 : vector<128x128xf32>
    %70 = arith.extui %69 : vector<128x128xi1> to vector<128x128xi32>
    %71 = arith.sitofp %70 : vector<128x128xi32> to vector<128x128xf32>
    %72 = tpu.transpose %71, [1, 0] : vector<128x128xf32> -> vector<128x128xf32>
    %73 = arith.addf %71, %72 : vector<128x128xf32>
    %cst_22 = arith.constant 0.000000e+00 : f32
    %74 = vector.broadcast %cst_22 : f32 to vector<128x128xf32>
    %75 = arith.cmpf ogt, %73, %74 : vector<128x128xf32>
    %76 = tpu.transpose %3, [1, 0] : vector<128x128xf32> -> vector<128x128xf32>
    %77 = arith.cmpi sgt, %34, %33 : vector<128x128xi32>
    %cst_23 = arith.constant 3.000000e-01 : f32
    %78 = vector.broadcast %cst_23 : f32 to vector<128x128xf32>
    %79 = arith.cmpf oge, %3, %78 : vector<128x128xf32>
    %80 = arith.andi %77, %79 : vector<128x128xi1>
    %81 = arith.cmpi sgt, %33, %34 : vector<128x128xi32>
    %cst_24 = arith.constant 3.000000e-01 : f32
    %82 = vector.broadcast %cst_24 : f32 to vector<128x128xf32>
    %83 = arith.cmpf oge, %76, %82 : vector<128x128xf32>
    %84 = arith.andi %81, %83 : vector<128x128xi1>
    %85 = arith.ori %80, %84 : vector<128x128xi1>
    %cst_25 = arith.constant dense<true> : vector<128x128xi1>
    %86 = arith.xori %44, %cst_25 : vector<128x128xi1>
    %87 = arith.andi %85, %86 : vector<128x128xi1>
    %88 = arith.ori %75, %87 : vector<128x128xi1>
    %89 = arith.ori %44, %88 : vector<128x128xi1>
    %90 = arith.andi %35, %40 : vector<128x128xi1>
    %91 = arith.andi %89, %90 : vector<128x128xi1>
    %92 = arith.extui %91 : vector<128x128xi1> to vector<128x128xi8>
    %c0_26 = arith.constant 0 : index
    %c0_27 = arith.constant 0 : index
    %c0_28 = arith.constant 0 : index
    %93 = vector.load %arg3[%c0_26, %c0_27, %c0_28] : memref<1x128x128xi8, #tpu.memory_space<vmem>>, vector<1x128x128xi8>
    %94 = vector.shape_cast %93 : vector<1x128x128xi8> to vector<128x128xi8>
    %95 = vector.shape_cast %92 : vector<128x128xi8> to vector<1x128x128xi8>
    tpu.vector_store %arg3[%c0_26, %c0_27, %c0_28], %95 {strides = array<i32>} : memref<1x128x128xi8, #tpu.memory_space<vmem>>, vector<1x128x128xi8>,
    return
  }
  func.func @transform_0(%arg0: i32) -> (i32, i32, i32) {
    %c0_i32 = arith.constant 0 : i32
    %c0_i32_0 = arith.constant 0 : i32
    %c0_i32_1 = arith.constant 0 : i32
    return %arg0, %c0_i32, %c0_i32_0 : i32, i32, i32
  }
  func.func @transform_1(%arg0: i32) -> (i32, i32, i32) {
    %c0_i32 = arith.constant 0 : i32
    %c0_i32_0 = arith.constant 0 : i32
    %c0_i32_1 = arith.constant 0 : i32
    return %arg0, %c0_i32, %c0_i32_0 : i32, i32, i32
  }
  func.func @transform_2(%arg0: i32) -> (i32, i32, i32) {
    %c0_i32 = arith.constant 0 : i32
    %c0_i32_0 = arith.constant 0 : i32
    %c0_i32_1 = arith.constant 0 : i32
    return %arg0, %c0_i32, %c0_i32_0 : i32, i32, i32
  }
  func.func @transform_3(%arg0: i32) -> (i32, i32, i32, i32) {
    %c0_i32 = arith.constant 0 : i32
    %c0_i32_0 = arith.constant 0 : i32
    %c0_i32_1 = arith.constant 0 : i32
    %c0_i32_2 = arith.constant 0 : i32
    return %arg0, %c0_i32, %c0_i32_0, %c0_i32_1 : i32, i32, i32, i32
  }
}

</mosaic_0001>

<bundles_post_ra>
// kernel: _build_graph.1
= control target key start
LH: loop header
LB: loop body
LE: loop exit
PB: predicated region body
PF: predicated region fallthrough
CT: control target
= control target key end

     0   :  { %s1608_s12 = smov 0   ;;  %s1992_s0 = inlined_call_operand.vmem [shape: f32[2,3,128], index: 0, kind: input, shape index: {}]   ;;  %s1993_s1 = inlined_call_operand.vmem [shape: f32[2,128,128], index: 1, kind: input, shape index: {}]   ;;  %s1994_s2 = inlined_call_operand.vmem [shape: s8[2,128,128], index: 2, kind: output, shape index: {0}]   ;;  %s1995_s3 = inlined_call_operand.vmem [shape: f32[2,3,128,128], index: 3, kind: output, shape index: {1}]  }
   0x1 LB: > { %s1426_s13 = sadd.s32 4294967295, %s1581_s12   ;;  %p1430_p0 = scmp.ge.s32.totalorder %s1581_s12, 1  ;;  %s1581_s12 = sphi %s1608_s12, %s14_s12  }
   0x2   : > { %p149_p1 = scmp.lt.s32.totalorder %s1581_s12, 3 }
   0x4   : > { %p150_p2 = pnand %p1430_p0, %p149_p1 }
   0x5   : > { %p182_p3 = scmp.lt.s32.totalorder (!%p150_p2), %s1426_s13, 1  ;;  %v220_v0 = vlaneseq (!%p150_p2)  ;;  %vm1585_vm14 = vmmov (!%p150_p2), 0  }
   0x6   : > { %153 = sbr.rel (%p150_p2) target bundleno = 945 (0x3b1), region = 28  ;;  %vm1902_vm15 = vmpackc.low (!%p150_p2), %vm1585_vm14, %vm1585_vm14 }
   0x7   : > { %v1619_v1 = vshrl.u32 (!%p150_p2), %v220_v0, 7 }
   0x9   : > { %v226_v2 = vsub.s32 (!%p150_p2), 1, %v1619_v1  ;;  %v222_v3 = vsub.s32 (!%p150_p2), 0, %v1619_v1  ;;  %v230_v7 = vsub.s32 (!%p150_p2), 2, %v1619_v1 }
   0xd   : > { %s2015_s13 = smov (!%p182_p3, %s1426_s13), 1 }
   0xe   : > { %s1431_s14 = sshll.u32 %s2015_s13, 2  ;;  %s1561_s18 = smul.u32 384, %s2015_s13 }
   0xf   : > { %s185_s17 = scalar_lea.vmem %s1992_s0, %s1431_s14  ;;  %s1559_s22 = sshll.u32 %s2015_s13, 7 }
  0x10   : > { %v203_v4 = vld [vmem:[%s185_s17] sm:$0x7]  ;;  %s1686_s21 = scalar_lea.vmem %s1995_s3, %s1561_s18  ;;  %s1845_s25 = scalar_lea.vmem %s1993_s1, %s1559_s22 }
  0x11   : > { %v1627_v5 = vrot.slane %v203_v4, %v226_v2  ;;  %v1629_v6 = vrot.slane %v203_v4, %v222_v3  ;;  %v1664_v8 = vrot.slane %v203_v4, %v230_v7  ;;  %s1560_s26 = sshll.u32 %s2015_s13, 5 }
  0x12   : > { %s1916_s29 = scalar_lea.vmem %s1994_s2, %s1560_s26 }
  0x13   : > { %280 = vxpose.xlu1.b32.start [1/16] %v1627_v5, 128  ;;  %232 = vxpose.xlu0.b32.start [1/16] %v1629_v6, 128 }
  0x17   : > { %281 = vxpose.xlu1.b32.cont [2/16] %v1627_v5, 128  ;;  %233 = vxpose.xlu0.b32.cont [2/16] %v1629_v6, 128 }
  0x1b   : > { %282 = vxpose.xlu1.b32.cont [3/16] %v1627_v5, 128  ;;  %234 = vxpose.xlu0.b32.cont [3/16] %v1629_v6, 128 }
  0x1f   : > { %283 = vxpose.xlu1.b32.cont [4/16] %v1627_v5, 128  ;;  %235 = vxpose.xlu0.b32.cont [4/16] %v1629_v6, 128 }
  0x23   : > { %284 = vxpose.xlu1.b32.cont [5/16] %v1627_v5, 128  ;;  %236 = vxpose.xlu0.b32.cont [5/16] %v1629_v6, 128 }
  0x27   : > { %285 = vxpose.xlu1.b32.cont [6/16] %v1627_v5, 128  ;;  %237 = vxpose.xlu0.b32.cont [6/16] %v1629_v6, 128 }
  0x2b   : > { %286 = vxpose.xlu1.b32.cont [7/16] %v1627_v5, 128  ;;  %238 = vxpose.xlu0.b32.cont [7/16] %v1629_v6, 128 }
  0x2f   : > { %287 = vxpose.xlu1.b32.cont [8/16] %v1627_v5, 128  ;;  %239 = vxpose.xlu0.b32.cont [8/16] %v1629_v6, 128 }
  0x33   : > { %288 = vxpose.xlu1.b32.cont [9/16] %v1627_v5, 128  ;;  %240 = vxpose.xlu0.b32.cont [9/16] %v1629_v6, 128 }
  0x37   : > { %289 = vxpose.xlu1.b32.cont [10/16] %v1627_v5, 128  ;;  %241 = vxpose.xlu0.b32.cont [10/16] %v1629_v6, 128 }
  0x3b   : > { %290 = vxpose.xlu1.b32.cont [11/16] %v1627_v5, 128  ;;  %242 = vxpose.xlu0.b32.cont [11/16] %v1629_v6, 128 }
  0x3f   : > { %291 = vxpose.xlu1.b32.cont [12/16] %v1627_v5, 128  ;;  %243 = vxpose.xlu0.b32.cont [12/16] %v1629_v6, 128 }
  0x43   : > { %292 = vxpose.xlu1.b32.cont [13/16] %v1627_v5, 128  ;;  %244 = vxpose.xlu0.b32.cont [13/16] %v1629_v6, 128 }
  0x47   : > { %293 = vxpose.xlu1.b32.cont [14/16] %v1627_v5, 128  ;;  %245 = vxpose.xlu0.b32.cont [14/16] %v1629_v6, 128 }
  0x4b   : > { %294 = vxpose.xlu1.b32.cont [15/16] %v1627_v5, 128  ;;  %246 = vxpose.xlu0.b32.cont [15/16] %v1629_v6, 128 }
  0x4f   : > { %295 = vxpose.xlu1.b32.end [16/16] %v1627_v5, 128  ;;  %247 = vxpose.xlu0.b32.end [16/16] %v1629_v6, 128 }
  0x53   : > { %328 = vxpose.xlu0.b32.start [1/16] %v1664_v8, 128 }
  0x57   : > { %329 = vxpose.xlu0.b32.cont [2/16] %v1664_v8, 128 }
  0x5b   : > { %330 = vxpose.xlu0.b32.cont [3/16] %v1664_v8, 128 }
  0x5f   : > { %331 = vxpose.xlu0.b32.cont [4/16] %v1664_v8, 128 }
  0x63   : > { %332 = vxpose.xlu0.b32.cont [5/16] %v1664_v8, 128 }
  0x67   : > { %333 = vxpose.xlu0.b32.cont [6/16] %v1664_v8, 128 }
  0x6b   : > { %334 = vxpose.xlu0.b32.cont [7/16] %v1664_v8, 128 }
  0x6f   : > { %335 = vxpose.xlu0.b32.cont [8/16] %v1664_v8, 128 }
  0x73   : > { %336 = vxpose.xlu0.b32.cont [9/16] %v1664_v8, 128 }
  0x77   : > { %337 = vxpose.xlu0.b32.cont [10/16] %v1664_v8, 128 }
  0x7b   : > { %338 = vxpose.xlu0.b32.cont [11/16] %v1664_v8, 128 }
  0x7f   : > { %339 = vxpose.xlu0.b32.cont [12/16] %v1664_v8, 128 }
  0x83   : > { %340 = vxpose.xlu0.b32.cont [13/16] %v1664_v8, 128 }
  0x87   : > { %341 = vxpose.xlu0.b32.cont [14/16] %v1664_v8, 128 }
  0x8b   : > { %342 = vxpose.xlu0.b32.cont [15/16] %v1664_v8, 128 }
  0x8f   : > { %343 = vxpose.xlu0.b32.end [16/16] %v1664_v8, 128 }
  0x93   : > { %v296_v9 = vpop.trf.xlu1  ;;  %v248_v10 = vpop.trf.xlu0 }
  0x94   : > { %v1689_v11 = vsub.f32 %v1627_v5, %v296_v9  ;;  %v1692_v12 = vsub.f32 %v1629_v6, %v248_v10 }
  0x96   : > { %1437 = vst [vmem:[%s1686_s21 + $0x80] sm:$0xff] %v1689_v11  ;;  %376 = vst [vmem:[%s1686_s21] sm:$0xff] %v1692_v12 }
  0x97   : > { %v297_v13 = vpop.trf.xlu1  ;;  %v249_v14 = vpop.trf.xlu0 }
  0x98   : > { %v1699_v15 = vsub.f32 %v1627_v5, %v297_v13  ;;  %v1702_v16 = vsub.f32 %v1629_v6, %v249_v14 }
  0x9a   : > { %1438 = vst [vmem:[%s1686_s21 + $0x88] sm:$0xff] %v1699_v15  ;;  %377 = vst [vmem:[%s1686_s21 + $0x8] sm:$0xff] %v1702_v16 }
  0x9b   : > { %v250_v17 = vpop.trf.xlu0  ;;  %v298_v18 = vpop.trf.xlu1 }
  0x9c   : > { %v266_v19 = vsub.f32 %v1629_v6, %v250_v17  ;;  %v314_v20 = vsub.f32 %v1627_v5, %v298_v18  ;;  %v1762_v17 = vand.u32 127, %v220_v0  ;;  %v1776_v0 = vadd.s32 8, %v1619_v1 }
  0x9e   : > { %378 = vst [vmem:[%s1686_s21 + $0x10] sm:$0xff] %v266_v19  ;;  %1439 = vst [vmem:[%s1686_s21 + $0x90] sm:$0xff] %v314_v20  ;;  %v442_v19 = vmul.f32 %v1689_v11, %v1689_v11  ;;  %v426_v20 = vmul.f32 %v1692_v12, %v1692_v12  ;;  %vm525_vm0 = vcmp.ne.s32.totalorder %v1619_v1, %v1762_v17  ;;  %vm557_vm1 = vcmp.lt.s32.totalorder %v1762_v17, 16 }
  0x9f   : > { %v251_v21 = vpop.trf.xlu0  ;;  %v299_v22 = vpop.trf.xlu1  ;;  %v427_v11 = vmul.f32 %v1702_v16, %v1702_v16  ;;  %vm1785_vm2 = vmand %vm557_vm1, %vm525_vm0  ;;  %vm526_vm3 = vcmp.ne.s32.totalorder %v1776_v0, %v1762_v17 }
  0xa0   : > { %v267_v23 = vsub.f32 %v1629_v6, %v251_v21  ;;  %v315_v24 = vsub.f32 %v1627_v5, %v299_v22  ;;  %vm1800_vm4 = vmand %vm557_vm1, %vm526_vm3 }
  0xa1   : > { %vm1251_vm1 = vmpackc.even %vm1902_vm15, %vm1902_vm15 }
  0xa2   : > { %379 = vst [vmem:[%s1686_s21 + $0x18] sm:$0xff] %v267_v23  ;;  %1440 = vst [vmem:[%s1686_s21 + $0x98] sm:$0xff] %v315_v24  ;;  %v2001_v24 = vmov 0 }
  0xa3   : > { %v252_v25 = vpop.trf.xlu0  ;;  %v300_v26 = vpop.trf.xlu1  ;;  %v2002_v24 = vsel %vm1785_vm2, 4294967295, %v2001_v24 }
  0xa4   : > { %v268_v27 = vsub.f32 %v1629_v6, %v252_v25  ;;  %v316_v28 = vsub.f32 %v1627_v5, %v300_v26 }
  0xa6   : > { %380 = vst [vmem:[%s1686_s21 + $0x20] sm:$0xff] %v268_v27  ;;  %1441 = vst [vmem:[%s1686_s21 + $0xa0] sm:$0xff] %v316_v28  ;;  %v2003_v28 = vmov 0 }
  0xa7   : > { %v253_v29 = vpop.trf.xlu0  ;;  %v301_v30 = vpop.trf.xlu1  ;;  %v2004_v28 = vsel %vm1800_vm4, 4294967295, %v2003_v28 }
  0xa8   : > { %v269_v31 = vsub.f32 %v1629_v6, %v253_v29  ;;  %v317_v32 = vsub.f32 %v1627_v5, %v301_v30 }
  0xaa   : > { %381 = vst [vmem:[%s1686_s21 + $0x28] sm:$0xff] %v269_v31  ;;  %1442 = vst [vmem:[%s1686_s21 + $0xa8] sm:$0xff] %v317_v32 }
  0xab   : > { %v254_v33 = vpop.trf.xlu0  ;;  %v302_v34 = vpop.trf.xlu1 }
  0xac   : > { %v270_v35 = vsub.f32 %v1629_v6, %v254_v33  ;;  %v318_v36 = vsub.f32 %v1627_v5, %v302_v34 }
  0xae   : > { %382 = vst [vmem:[%s1686_s21 + $0x30] sm:$0xff] %v270_v35  ;;  %1443 = vst [vmem:[%s1686_s21 + $0xb0] sm:$0xff] %v318_v36  ;;  %v1583_v35 = vmov 1e+30  }
  0xaf   : > { %v255_v37 = vpop.trf.xlu0  ;;  %v303_v38 = vpop.trf.xlu1 }
  0xb0   : > { %v271_v39 = vsub.f32 %v1629_v6, %v255_v37  ;;  %v319_v40 = vsub.f32 %v1627_v5, %v303_v38 }
  0xb2   : > { %383 = vst [vmem:[%s1686_s21 + $0x38] sm:$0xff] %v271_v39  ;;  %1444 = vst [vmem:[%s1686_s21 + $0xb8] sm:$0xff] %v319_v40 }
  0xb3   : > { %v256_v41 = vpop.trf.xlu0  ;;  %v304_v42 = vpop.trf.xlu1 }
  0xb4   : > { %v272_v43 = vsub.f32 %v1629_v6, %v256_v41  ;;  %v320_v44 = vsub.f32 %v1627_v5, %v304_v42 }
  0xb6   : > { %384 = vst [vmem:[%s1686_s21 + $0x40] sm:$0xff] %v272_v43  ;;  %1445 = vst [vmem:[%s1686_s21 + $0xc0] sm:$0xff] %v320_v44 }
  0xb7   : > { %v257_v45 = vpop.trf.xlu0  ;;  %v305_v46 = vpop.trf.xlu1 }
  0xb8   : > { %v273_v47 = vsub.f32 %v1629_v6, %v257_v45  ;;  %v321_v48 = vsub.f32 %v1627_v5, %v305_v46 }
  0xba   : > { %385 = vst [vmem:[%s1686_s21 + $0x48] sm:$0xff] %v273_v47  ;;  %1446 = vst [vmem:[%s1686_s21 + $0xc8] sm:$0xff] %v321_v48 }
  0xbb   : > { %v258_v49 = vpop.trf.xlu0  ;;  %v306_v50 = vpop.trf.xlu1 }
  0xbc   : > { %v274_v51 = vsub.f32 %v1629_v6, %v258_v49  ;;  %v322_v52 = vsub.f32 %v1627_v5, %v306_v50  ;;  %882 = vmin.xlane.f32.xlu0 %v1583_v35 }
  0xbe   : > { %386 = vst [vmem:[%s1686_s21 + $0x50] sm:$0xff] %v274_v51  ;;  %1447 = vst [vmem:[%s1686_s21 + $0xd0] sm:$0xff] %v322_v52 }
  0xbf   : > { %v259_v53 = vpop.trf.xlu0  ;;  %v307_v54 = vpop.trf.xlu1 }
  0xc0   : > { %v275_v55 = vsub.f32 %v1629_v6, %v259_v53  ;;  %v323_v56 = vsub.f32 %v1627_v5, %v307_v54  ;;  %906 = vmin.xlane.f32.xlu0 %v1583_v35 }
  0xc2   : > { %387 = vst [vmem:[%s1686_s21 + $0x58] sm:$0xff] %v275_v55  ;;  %1448 = vst [vmem:[%s1686_s21 + $0xd8] sm:$0xff] %v323_v56 }
  0xc3   : > { %v260_v57 = vpop.trf.xlu0  ;;  %v308_v58 = vpop.trf.xlu1 }
  0xc4   : > { %v276_v59 = vsub.f32 %v1629_v6, %v260_v57  ;;  %v324_v60 = vsub.f32 %v1627_v5, %v308_v58 }
  0xc6   : > { %388 = vst [vmem:[%s1686_s21 + $0x60] sm:$0xff] %v276_v59  ;;  %1449 = vst [vmem:[%s1686_s21 + $0xe0] sm:$0xff] %v324_v60 }
  0xc7   : > { %v261_v61 = vpop.trf.xlu0  ;;  %v309_v62 = vpop.trf.xlu1 }
  0xc8   : > { %v277_v63 = vsub.f32 %v1629_v6, %v261_v61  ;;  %v325_v2 = vsub.f32 %v1627_v5, %v309_v62 }
  0xca   : > { %389 = vst [vmem:[%s1686_s21 + $0x68] sm:$0xff] %v277_v63  ;;  %1450 = vst [vmem:[%s1686_s21 + $0xe8] sm:$0xff] %v325_v2 }
  0xcb   : > { %v262_v3 = vpop.trf.xlu0  ;;  %v310_v4 = vpop.trf.xlu1 }
  0xcc   : > { %v278_v7 = vsub.f32 %v1629_v6, %v262_v3  ;;  %v326_v9 = vsub.f32 %v1627_v5, %v310_v4 }
  0xce   : > { %390 = vst [vmem:[%s1686_s21 + $0x70] sm:$0xff] %v278_v7  ;;  %1451 = vst [vmem:[%s1686_s21 + $0xf0] sm:$0xff] %v326_v9 }
  0xcf   : > { %v263_v10 = vpop.trf.xlu0  ;;  %v311_v13 = vpop.trf.xlu1 }
  0xd0   : > { %v279_v14 = vsub.f32 %v1629_v6, %v263_v10  ;;  %v327_v18 = vsub.f32 %v1627_v5, %v311_v13  ;;  %v458_v5 = vadd.f32 %v442_v19, %v426_v20  ;;  %v443_v6 = vmul.f32 %v1699_v15, %v1699_v15  ;;  %v206_v19 = vld [vmem:[%s1845_s25 + $0x10] sm:$0xff]  ;;  %v207_v20 = vld [vmem:[%s1845_s25 + $0x18] sm:$0xff] }
  0xd2   : > { %391 = vst [vmem:[%s1686_s21 + $0x78] sm:$0xff] %v279_v14  ;;  %1452 = vst [vmem:[%s1686_s21 + $0xf8] sm:$0xff] %v327_v18  ;;  %v459_v27 = vadd.f32 %v443_v6, %v427_v11  ;;  %v1848_v18 = vld [vmem:[%s1845_s25] sm:$0xff]  ;;  %v210_v11 = vld [vmem:[%s1845_s25 + $0x30] sm:$0xff] }
  0xd3   : > { %v344_v21 = vpop.trf.xlu0 }
  0xd4   : > { %v360_v22 = vsub.f32 %v1664_v8, %v344_v21  ;;  %v208_v21 = vld [vmem:[%s1845_s25 + $0x20] sm:$0xff] }
  0xd6   : > { %1453 = vst [vmem:[%s1686_s21 + $0x100] sm:$0xff] %v360_v22  ;;  %v474_v12 = vmul.f32 %v360_v22, %v360_v22 }
  0xd7   : > { %v345_v23 = vpop.trf.xlu0 }
  0xd8   : > { %v490_v25 = vadd.f32 %v474_v12, %v458_v5  ;;  %v361_v26 = vsub.f32 %v1664_v8, %v345_v23  ;;  %v209_v5 = vld [vmem:[%s1845_s25 + $0x28] sm:$0xff]  ;;  %v211_v12 = vld [vmem:[%s1845_s25 + $0x38] sm:$0xff] }
  0xda   : > { %1454 = vst [vmem:[%s1686_s21 + $0x108] sm:$0xff] %v361_v26  ;;  %v475_v15 = vmul.f32 %v361_v26, %v361_v26  ;;  %v1795_v16 = vsel %vm1785_vm2, %v490_v25, 1e+30  ;;  %v212_v25 = vld [vmem:[%s1845_s25 + $0x40] sm:$0xff] }
  0xdb   : > { %686 = vmin.xlane.f32.xlu1 %v1795_v16  ;;  %v346_v40 = vpop.trf.xlu0 }
  0xdc   : > { %v491_v29 = vadd.f32 %v475_v15, %v459_v27  ;;  %v362_v41 = vsub.f32 %v1664_v8, %v346_v40  ;;  %v213_v27 = vld [vmem:[%s1845_s25 + $0x48] sm:$0xff]  ;;  %v214_v15 = vld [vmem:[%s1845_s25 + $0x50] sm:$0xff] }
  0xde   : > { %v1806_v30 = vsel %vm1800_vm4, %v491_v29, 1e+30  ;;  %1455 = vst [vmem:[%s1686_s21 + $0x110] sm:$0xff] %v362_v41 }
  0xdf   : > { %688 = vmin.xlane.f32.xlu1 %v1806_v30  ;;  %v347_v42 = vpop.trf.xlu0 }
  0xe0   : > { %v363_v43 = vsub.f32 %v1664_v8, %v347_v42 }
  0xe2   : > { %1456 = vst [vmem:[%s1686_s21 + $0x118] sm:$0xff] %v363_v43 }
  0xe3   : > { %v348_v44 = vpop.trf.xlu0 }
  0xe4   : > { %v364_v45 = vsub.f32 %v1664_v8, %v348_v44  ;;  %v1584_v44 = vmov 0.0  }
  0xe6   : > { %1457 = vst [vmem:[%s1686_s21 + $0x120] sm:$0xff] %v364_v45 }
  0xe7   : > { %v349_v46 = vpop.trf.xlu0 }
  0xe8   : > { %v365_v47 = vsub.f32 %v1664_v8, %v349_v46 }
  0xea   : > { %1458 = vst [vmem:[%s1686_s21 + $0x128] sm:$0xff] %v365_v47 }
  0xeb   : > { %v350_v48 = vpop.trf.xlu0 }
  0xec   : > { %v366_v49 = vsub.f32 %v1664_v8, %v350_v48 }
  0xee   : > { %1459 = vst [vmem:[%s1686_s21 + $0x130] sm:$0xff] %v366_v49 }
  0xef   : > { %v351_v50 = vpop.trf.xlu0 }
  0xf0   : > { %v367_v51 = vsub.f32 %v1664_v8, %v351_v50 }
  0xf2   : > { %1460 = vst [vmem:[%s1686_s21 + $0x138] sm:$0xff] %v367_v51 }
  0xf3   : > { %v352_v52 = vpop.trf.xlu0 }
  0xf4   : > { %v368_v53 = vsub.f32 %v1664_v8, %v352_v52 }
  0xf6   : > { %1461 = vst [vmem:[%s1686_s21 + $0x140] sm:$0xff] %v368_v53 }
  0xf7   : > { %v353_v54 = vpop.trf.xlu0 }
  0xf8   : > { %v369_v55 = vsub.f32 %v1664_v8, %v353_v54 }
  0xfa   : > { %1462 = vst [vmem:[%s1686_s21 + $0x148] sm:$0xff] %v369_v55 }
  0xfb   : > { %v354_v56 = vpop.trf.xlu0 }
  0xfc   : > { %v370_v57 = vsub.f32 %v1664_v8, %v354_v56 }
  0xfe   : > { %1463 = vst [vmem:[%s1686_s21 + $0x150] sm:$0xff] %v370_v57 }
  0xff   : > { %v355_v58 = vpop.trf.xlu0 }
 0x100   : > { %v371_v59 = vsub.f32 %v1664_v8, %v355_v58 }
 0x102   : > { %1464 = vst [vmem:[%s1686_s21 + $0x158] sm:$0xff] %v371_v59 }
 0x103   : > { %v356_v60 = vpop.trf.xlu0 }
 0x104   : > { %v372_v61 = vsub.f32 %v1664_v8, %v356_v60 }
 0x106   : > { %1465 = vst [vmem:[%s1686_s21 + $0x160] sm:$0xff] %v372_v61 }
 0x107   : > { %v357_v62 = vpop.trf.xlu0 }
 0x108   : > { %v373_v63 = vsub.f32 %v1664_v8, %v357_v62 }
 0x10a   : > { %1466 = vst [vmem:[%s1686_s21 + $0x168] sm:$0xff] %v373_v63 }
 0x10b   : > { %v358_v9 = vpop.trf.xlu0 }
 0x10c   : > { %v374_v10 = vsub.f32 %v1664_v8, %v358_v9 }
 0x10e   : > { %1467 = vst [vmem:[%s1686_s21 + $0x170] sm:$0xff] %v374_v10 }
 0x10f   : > { %v359_v13 = vpop.trf.xlu0 }
 0x110   : > { %v375_v14 = vsub.f32 %v1664_v8, %v359_v13  ;;  %v1852_v8 = vld [vmem:[%s1845_s25 + $0x8] sm:$0xff] }
 0x112   : > { %1468 = vst [vmem:[%s1686_s21 + $0x178] sm:$0xff] %v375_v14 }
 0x149   : > { %v883_v46 = vpop.xlane.xlu0 %882 }
 0x14a   : > { %vm1527_vm13 = vcmp.ge.f32.partialorder %v883_v46, 1e+30 }
 0x14b   : > { %v1543_v49 = vsel %vm1527_vm13, 1.0, %v1584_v44 }
 0x168   : > { %v687_v31 = vpop.xlane.xlu1 %686 }
 0x169   : > { %vm718_vm5 = vcmp.le.f32.partialorder %v1795_v16, %v687_v31  ;;  %v215_v31 = vld [vmem:[%s1845_s25 + $0x58] sm:$0xff] }
 0x16a   : > { %v734_v32 = vsel %vm718_vm5, 1e+30, %v1795_v16 }
 0x16b   : > { %750 = vmin.xlane.f32.xlu1 %v734_v32 }
 0x16c   : > { %v689_v33 = vpop.xlane.xlu1 %688 }
 0x16d   : > { %vm719_vm6 = vcmp.le.f32.partialorder %v1806_v30, %v689_v33  ;;  %v216_v33 = vld [vmem:[%s1845_s25 + $0x60] sm:$0xff] }
 0x16e   : > { %v735_v34 = vsel %vm719_vm6, 1e+30, %v1806_v30 }
 0x16f   : > { %752 = vmin.xlane.f32.xlu1 %v735_v34 }
 0x1f8   : > { %v751_v36 = vpop.xlane.xlu1 %750 }
 0x1f9   : > { %vm782_vm7 = vcmp.le.f32.partialorder %v734_v32, %v751_v36  ;;  %v218_v36 = vld [vmem:[%s1845_s25 + $0x70] sm:$0xff] }
 0x1fa   : > { %v798_v37 = vsel %vm782_vm7, 1e+30, %v734_v32 }
 0x1fb   : > { %814 = vmin.xlane.f32.xlu1 %v798_v37 }
 0x1fc   : > { %v753_v38 = vpop.xlane.xlu1 %752 }
 0x1fd   : > { %vm783_vm8 = vcmp.le.f32.partialorder %v735_v34, %v753_v38  ;;  %v219_v38 = vld [vmem:[%s1845_s25 + $0x78] sm:$0xff] }
 0x1fe   : > { %v799_v39 = vsel %vm783_vm8, 1e+30, %v735_v34  ;;  %v217_v34 = vld [vmem:[%s1845_s25 + $0x68] sm:$0xff] }
 0x1ff   : > { %816 = vmin.xlane.f32.xlu1 %v799_v39 }
 0x203   : > { %884 = vmin.xlane.f32.xlu1 %v1583_v35 }
 0x207   : > { %886 = vmin.xlane.f32.xlu1 %v1583_v35 }
 0x20b   : > { %888 = vmin.xlane.f32.xlu1 %v1583_v35 }
 0x20f   : > { %890 = vmin.xlane.f32.xlu1 %v1583_v35 }
 0x213   : > { %892 = vmin.xlane.f32.xlu1 %v1583_v35 }
 0x217   : > { %894 = vmin.xlane.f32.xlu1 %v1583_v35 }
 0x21b   : > { %896 = vmin.xlane.f32.xlu1 %v1583_v35 }
 0x21f   : > { %898 = vmin.xlane.f32.xlu1 %v1583_v35 }
 0x223   : > { %900 = vmin.xlane.f32.xlu1 %v1583_v35 }
 0x227   : > { %902 = vmin.xlane.f32.xlu1 %v1583_v35 }
 0x22b   : > { %904 = vmin.xlane.f32.xlu1 %v1583_v35 }
 0x22f   : > { %908 = vmin.xlane.f32.xlu1 %v1583_v35 }
 0x288   : > { %v815_v2 = vpop.xlane.xlu1 %814 }
 0x289   : > { %vm846_vm9 = vcmp.le.f32.partialorder %v798_v37, %v815_v2 }
 0x28a   : > { %v862_v3 = vsel %vm846_vm9, 1e+30, %v798_v37 }
 0x28b   : > { %878 = vmin.xlane.f32.xlu1 %v862_v3 }
 0x28c   : > { %v817_v4 = vpop.xlane.xlu1 %816 }
 0x28d   : > { %vm847_vm10 = vcmp.le.f32.partialorder %v799_v39, %v817_v4 }
 0x28e   : > { %v863_v7 = vsel %vm847_vm10, 1e+30, %v799_v39 }
 0x28f   : > { %880 = vmin.xlane.f32.xlu1 %v863_v7 }
 0x290   : > { %v885_v22 = vpop.xlane.xlu1 %884 }
 0x291   : > { %vm1528_vm0 = vcmp.ge.f32.partialorder %v885_v22, 1e+30 }
 0x292   : > { %v1544_v55 = vsel %vm1528_vm0, 1.0, %v1584_v44 }
 0x294   : > { %v1859_v6 = vpop.xlane.xlu1 %886 }
 0x295   : > { %vm1529_vm3 = vcmp.ge.f32.partialorder %v1859_v6, 1e+30  ;;  %v574_v6 = vsub.s32 %v1619_v1, %v1762_v17 }
 0x296   : > { %v1545_v2 = vsel %vm1529_vm3, 1.0, %v1584_v44  ;;  %vm1054_vm3 = vcmp.gt.s32.totalorder %v1762_v17, %v1619_v1 }
 0x298   : > { %v1863_v23 = vpop.xlane.xlu1 %888 }
 0x299   : > { %vm1530_vm5 = vcmp.ge.f32.partialorder %v1863_v23, 1e+30 }
 0x29a   : > { %v1546_v3 = vsel %vm1530_vm5, 1.0, %v1584_v44 }
 0x29c   : > { %v1866_v26 = vpop.xlane.xlu1 %890 }
 0x29d   : > { %vm1531_vm6 = vcmp.ge.f32.partialorder %v1866_v26, 1e+30 }
 0x29e   : > { %v1547_v4 = vsel %vm1531_vm6, 1.0, %v1584_v44  ;;  %vm1102_vm6 = vcmp.gt.s32.totalorder %v1619_v1, %v1762_v17 }
 0x2a0   : > { %v1870_v29 = vpop.xlane.xlu1 %892 }
 0x2a1   : > { %vm1532_vm7 = vcmp.ge.f32.partialorder %v1870_v29, 1e+30 }
 0x2a2   : > { %v1548_v7 = vsel %vm1532_vm7, 1.0, %v1584_v44 }
 0x2a4   : > { %v1873_v32 = vpop.xlane.xlu1 %894 }
 0x2a5   : > { %vm1533_vm8 = vcmp.ge.f32.partialorder %v1873_v32, 1e+30 }
 0x2a6   : > { %v1549_v9 = vsel %vm1533_vm8, 1.0, %v1584_v44 }
 0x2a8   : > { %v1877_v35 = vpop.xlane.xlu1 %896 }
 0x2a9   : > { %vm1534_vm9 = vcmp.ge.f32.partialorder %v1877_v35, 1e+30 }
 0x2aa   : > { %v1550_v10 = vsel %vm1534_vm9, 1.0, %v1584_v44  ;;  %vm1055_vm9 = vcmp.gt.s32.totalorder %v1762_v17, %v1776_v0 }
 0x2ac   : > { %v1880_v37 = vpop.xlane.xlu1 %898 }
 0x2ad   : > { %vm1535_vm10 = vcmp.ge.f32.partialorder %v1880_v37, 1e+30 }
 0x2ae   : > { %v1551_v13 = vsel %vm1535_vm10, 1.0, %v1584_v44  ;;  %vm1071_vm10 = vcmp.ge.f32.partialorder %v1852_v8, 0.3 }
 0x2af   : > { %vm1087_vm4 = vmand %vm1055_vm9, %vm1071_vm10 }
 0x2b0   : > { %v1883_v39 = vpop.xlane.xlu1 %900 }
 0x2b4   : > { %v1885_v40 = vpop.xlane.xlu1 %902 }
 0x2b8   : > { %v1887_v41 = vpop.xlane.xlu1 %904 }
 0x2b9   : > { %vm1538_vm13 = vcmp.ge.f32.partialorder %v1887_v41, 1e+30 }
 0x2bc   : > { %v1889_v42 = vpop.xlane.xlu1 %908 }
 0x2bd   : > { %vm1540_vm0 = vcmp.ge.f32.partialorder %v1889_v42, 1e+30 }
 0x2c2   : > { %1022 = vxpose.xlu1.b32.start [1/16] (narrow) %v1848_v18, 16 }
 0x2c6   : > { %1023 = vxpose.xlu1.b32.cont [2/16] (narrow) %v1852_v8, 16 }
 0x2ca   : > { %1024 = vxpose.xlu1.b32.cont [3/16] (narrow) %v206_v19, 16 }
 0x2ce   : > { %1025 = vxpose.xlu1.b32.cont [4/16] (narrow) %v207_v20, 16  ;;  %v907_v20 = vpop.xlane.xlu0 %906 }
 0x2cf   : > { %vm1539_vm14 = vcmp.ge.f32.partialorder %v907_v20, 1e+30 }
 0x2d0   : > { %v1555_v22 = vsel %vm1539_vm14, 1.0, %v1584_v44 }
 0x2d2   : > { %1026 = vxpose.xlu1.b32.cont [5/16] (narrow) %v208_v21, 16  ;;  %v1554_v21 = vsel %vm1538_vm13, 1.0, %v1584_v44  ;;  %vm1103_vm13 = vcmp.gt.s32.totalorder %v1776_v0, %v1762_v17 }
 0x2d6   : > { %1027 = vxpose.xlu1.b32.cont [6/16] (narrow) %v209_v5, 16  ;;  %v1556_v5 = vsel %vm1540_vm0, 1.0, %v1584_v44 }
 0x2da   : > { %1028 = vxpose.xlu1.b32.cont [7/16] (narrow) %v210_v11, 16  ;;  %v591_v11 = vsub.s32 0, %v574_v6 }
 0x2de   : > { %1029 = vxpose.xlu1.b32.cont [8/16] (narrow) %v211_v12, 16  ;;  %v575_v12 = vsub.s32 %v1776_v0, %v1762_v17 }
 0x2e0   : > { %v594_v26 = vsub.s32 0, %v575_v12 }
 0x2e2   : > { %1030 = vxpose.xlu1.b32.cont [9/16] (narrow) %v212_v25, 16  ;;  %v1469_v25 = vmin.u32 %v591_v11, %v574_v6 }
 0x2e4   : > { %vm1999_vm5 = vcmp.eq.s32.totalorder %v1469_v25, 1 }
 0x2e6   : > { %1031 = vxpose.xlu1.b32.cont [10/16] (narrow) %v213_v27, 16 }
 0x2ea   : > { %1032 = vxpose.xlu1.b32.cont [11/16] (narrow) %v214_v15, 16  ;;  %v1470_v15 = vmin.u32 %v594_v26, %v575_v12 }
 0x2ee   : > { %1033 = vxpose.xlu1.b32.cont [12/16] (narrow) %v215_v31, 16 }
 0x2f2   : > { %1034 = vxpose.xlu1.b32.cont [13/16] (narrow) %v216_v33, 16 }
 0x2f6   : > { %1035 = vxpose.xlu1.b32.cont [14/16] (narrow) %v217_v34, 16 }
 0x2fa   : > { %1036 = vxpose.xlu1.b32.cont [15/16] (narrow) %v218_v36, 16 }
 0x2fe   : > { %1037 = vxpose.xlu1.b32.end [16/16] (narrow) %v219_v38, 16 }
 0x318   : > { %v879_v43 = vpop.xlane.xlu1 %878 }
 0x319   : > { %vm910_vm11 = vcmp.le.f32.partialorder %v1795_v16, %v879_v43  ;;  %v2005_v16 = vmov 0 }
 0x31a   : > { %v1893_v45 = vsel %vm910_vm11, 1.0, %v1584_v44  ;;  %v2006_v16 = vsel %vm1902_vm15, 4294967295, %v2005_v16  ;;  %vm1536_vm11 = vcmp.ge.f32.partialorder %v1883_v39, 1e+30  ;;  %vm2000_vm15 = vcmp.eq.s32.totalorder %v1470_v15, 1 }
 0x31b   : > { %958 = vxpose.xlu0.b32.start [1/16] (narrow) %v1893_v45, 16  ;;  %v1552_v14 = vsel %vm1536_vm11, 1.0, %v1584_v44  ;;  %vm1587_vm11 = vmmov 1  }
 0x31c   : > { %v881_v47 = vpop.xlane.xlu1 %880 }
 0x31d   : > { %vm911_vm12 = vcmp.le.f32.partialorder %v1806_v30, %v881_v47  ;;  %v1586_v30 = vmov 0  }
 0x31e   : > { %v1898_v48 = vsel %vm911_vm12, 1.0, %v1584_v44  ;;  %v1259_v50 = vsel %vm1251_vm1, 16843009, %v1586_v30  ;;  %vm1537_vm12 = vcmp.ge.f32.partialorder %v1885_v40, 1e+30 }
 0x31f   : > { %959 = vxpose.xlu0.b32.cont [2/16] (narrow) %v1898_v48, 16  ;;  %v1266_v51 = vunpack.c.0.s8 %v1259_v50  ;;  %v1267_v52 = vunpack.c.1.s8 %v1259_v50  ;;  %v1268_v53 = vunpack.c.2.s8 %v1259_v50  ;;  %v1269_v54 = vunpack.c.3.s8 %v1259_v50 }
 0x320   : > { %v1553_v19 = vsel %vm1537_vm12, 1.0, %v1584_v44  ;;  %vm1070_vm1 = vcmp.ge.f32.partialorder %v1848_v18, 0.3  ;;  %vm1166_vm12 = vmxor %vm1999_vm5, %vm1587_vm11 }
 0x321   : > { %v1286_v56 = vpack.c.b16 %v1266_v51, %v1266_v51  ;;  %v1288_v57 = vpack.c.b16 %v1267_v52, %v1267_v52  ;;  %v1290_v58 = vpack.c.b16 %v1268_v53, %v1268_v53  ;;  %v1292_v59 = vpack.c.b16 %v1269_v54, %v1269_v54  ;;  %vm1961_vm8 = vmand %vm1054_vm3, %vm1070_vm1 }
 0x322   : > { %vm1167_vm3 = vmxor %vm2000_vm15, %vm1587_vm11 }
 0x323   : > { %960 = vxpose.xlu0.b32.cont [3/16] (narrow) %v1543_v49, 16  ;;  %v1287_v60 = vpack.c.b8 %v1286_v56, %v1286_v56  ;;  %v1289_v61 = vpack.c.b8 %v1288_v57, %v1288_v57  ;;  %v1291_v62 = vpack.c.b8 %v1290_v58, %v1290_v58  ;;  %v1293_v63 = vpack.c.b8 %v1292_v59, %v1292_v59 }
 0x325   : > { %1314 = vst [vmem:[%s1916_s29 + $0x8] sm:$0x3] %v1287_v60  ;;  %1315 = vst [vmem:[%s1916_s29 + $0xa] sm:$0x3] %v1289_v61 }
 0x326   : > { %1316 = vst [vmem:[%s1916_s29 + $0xc] sm:$0x3] %v1291_v62  ;;  %1317 = vst [vmem:[%s1916_s29 + $0xe] sm:$0x3] %v1293_v63 }
 0x327   : > { %961 = vxpose.xlu0.b32.cont [4/16] (narrow) %v1544_v55, 16  ;;  %1318 = vst [vmem:[%s1916_s29 + $0x10] sm:$0x3] %v1287_v60  ;;  %1319 = vst [vmem:[%s1916_s29 + $0x12] sm:$0x3] %v1289_v61 }
 0x328   : > { %1320 = vst [vmem:[%s1916_s29 + $0x14] sm:$0x3] %v1291_v62  ;;  %1321 = vst [vmem:[%s1916_s29 + $0x16] sm:$0x3] %v1293_v63 }
 0x329   : > { %1322 = vst [vmem:[%s1916_s29 + $0x18] sm:$0x3] %v1287_v60  ;;  %1323 = vst [vmem:[%s1916_s29 + $0x1a] sm:$0x3] %v1289_v61 }
 0x32a   : > { %1324 = vst [vmem:[%s1916_s29 + $0x1c] sm:$0x3] %v1291_v62  ;;  %1325 = vst [vmem:[%s1916_s29 + $0x1e] sm:$0x3] %v1293_v63 }
 0x32b   : > { %962 = vxpose.xlu0.b32.cont [5/16] (narrow) %v1545_v2, 16 }
 0x32f   : > { %963 = vxpose.xlu0.b32.cont [6/16] (narrow) %v1546_v3, 16 }
 0x333   : > { %964 = vxpose.xlu0.b32.cont [7/16] (narrow) %v1547_v4, 16 }
 0x337   : > { %965 = vxpose.xlu0.b32.cont [8/16] (narrow) %v1548_v7, 16 }
 0x33b   : > { %966 = vxpose.xlu0.b32.cont [9/16] (narrow) %v1549_v9, 16 }
 0x33f   : > { %967 = vxpose.xlu0.b32.cont [10/16] (narrow) %v1550_v10, 16 }
 0x342   : > { %v1038_v23 = vpop.trf.xlu1 }
 0x343   : > { %968 = vxpose.xlu0.b32.cont [11/16] (narrow) %v1551_v13, 16  ;;  %vm1118_vm7 = vcmp.ge.f32.partialorder %v1038_v23, 0.3 }
 0x344   : > { %vm1134_vm0 = vmand %vm1102_vm6, %vm1118_vm7 }
 0x345   : > { %vm1150_vm1 = vmor %vm1961_vm8, %vm1134_vm0  ;;  %vm2010_vm0 = vnez %v2002_v24 }
 0x346   : > { %v1039_v27 = vpop.trf.xlu1  ;;  %vm1182_vm6 = vmand %vm1150_vm1, %vm1166_vm12  ;;  %vm2012_vm1 = vnez %v2004_v28 }
 0x347   : > { %969 = vxpose.xlu0.b32.cont [12/16] (narrow) %v1552_v14, 16  ;;  %vm1119_vm14 = vcmp.ge.f32.partialorder %v1039_v27, 0.3 }
 0x348   : > { %vm1135_vm2 = vmand %vm1103_vm13, %vm1119_vm14  ;;  %vm2009_vm13 = vcmp.eq.s32.totalorder %v1469_v25, 1 }
 0x349   : > { %vm1151_vm5 = vmor %vm1087_vm4, %vm1135_vm2  ;;  %vm2011_vm2 = vcmp.eq.s32.totalorder %v1470_v15, 1 }
 0x34a   : > { %vm1183_vm9 = vmand %vm1151_vm5, %vm1167_vm3  ;;  %vm2013_vm5 = vnez %v2006_v16 }
 0x34b   : > { %970 = vxpose.xlu0.b32.cont [13/16] (narrow) %v1553_v19, 16 }
 0x34f   : > { %971 = vxpose.xlu0.b32.cont [14/16] (narrow) %v1554_v21, 16 }
 0x353   : > { %972 = vxpose.xlu0.b32.cont [15/16] (narrow) %v1555_v22, 16 }
 0x357   : > { %973 = vxpose.xlu0.b32.end [16/16] (narrow) %v1556_v5, 16 }
 0x39b   : > { %v974_v1 = vpop.trf.xlu0 }
 0x39c   : > { %v990_v18 = vadd.f32 %v1893_v45, %v974_v1 }
 0x39e   : > { %vm1006_vm7 = vcmp.gt.f32.partialorder %v990_v18, 0.0 }
 0x39f   : > { %vm1198_vm10 = vmor %vm1006_vm7, %vm1182_vm6  ;;  %v975_v8 = vpop.trf.xlu0 }
 0x3a0   : > { %vm1214_vm14 = vmor %vm2009_vm13, %vm1198_vm10  ;;  %v991_v17 = vadd.f32 %v1898_v48, %v975_v8 }
 0x3a1   : > { %vm1230_vm8 = vmand %vm1214_vm14, %vm2010_vm0 }
 0x3a2   : > { %vm1007_vm11 = vcmp.gt.f32.partialorder %v991_v17, 0.0 }
 0x3a3   : > { %vm1199_vm15 = vmor %vm1007_vm11, %vm1183_vm9 }
 0x3a4   : > { %vm1215_vm4 = vmor %vm2011_vm2, %vm1199_vm15 }
 0x3a5   : > { %vm1231_vm12 = vmand %vm1215_vm4, %vm2012_vm1 }
 0x3a6   : > { %vm1246_vm3 = vmpackc.low %vm1231_vm12, %vm1230_vm8 }
 0x3a7   : > { %vm1248_vm6 = vmpackc.even %vm2013_vm5, %vm1246_vm3 }
 0x3a8   : > { %v1258_v0 = vsel %vm1248_vm6, 16843009, %v1586_v30 }
 0x3a9   : > { %v1262_v31 = vunpack.c.0.s8 %v1258_v0  ;;  %v1263_v24 = vunpack.c.1.s8 %v1258_v0  ;;  %v1264_v32 = vunpack.c.2.s8 %v1258_v0  ;;  %v1265_v33 = vunpack.c.3.s8 %v1258_v0 }
 0x3ab   : > { %v1278_v34 = vpack.c.b16 %v1262_v31, %v1262_v31  ;;  %v1280_v35 = vpack.c.b16 %v1263_v24, %v1263_v24  ;;  %v1282_v36 = vpack.c.b16 %v1264_v32, %v1264_v32  ;;  %v1284_v37 = vpack.c.b16 %v1265_v33, %v1265_v33 }
 0x3ad   : > { %v1279_v28 = vpack.c.b8 %v1278_v34, %v1278_v34  ;;  %v1281_v38 = vpack.c.b8 %v1280_v35, %v1280_v35  ;;  %v1283_v39 = vpack.c.b8 %v1282_v36, %v1282_v36  ;;  %v1285_v40 = vpack.c.b8 %v1284_v37, %v1284_v37 }
 0x3af   : > { %1310 = vst [vmem:[%s1916_s29] sm:$0x3] %v1279_v28  ;;  %1311 = vst [vmem:[%s1916_s29 + $0x2] sm:$0x3] %v1281_v38 }
 0x3b0   : > { %1312 = vst [vmem:[%s1916_s29 + $0x4] sm:$0x3] %v1283_v39  ;;  %1313 = vst [vmem:[%s1916_s29 + $0x6] sm:$0x3] %v1285_v40 }
 0x3b1 PF: > { %s14_s12 = sadd.s32 1, %s1581_s12  }
 0x3b2   : > { %p11_p4 = scmp.ge.s32.totalorder %s14_s12, 4  }
 0x3b4   :  { %13 = sbr.rel (!%p11_p4) target bundleno = 1 (0x1), region = 75 }

</bundles_post_ra>
